<compile_context>
chip_gen: v7x
topology: tpu7x:2x2x1
jax: 0.10.0
libtpu: 0.0.40
codegen_flags: <defaults>
</compile_context>

<pallas_src>
from functools import partial

import numpy as np
import jax
import jax.numpy as jnp
from jax.experimental import pallas as pl
from jax.experimental.pallas import tpu as pltpu


_VMEM_LIMIT = 48 * 1024 * 1024  # above 32 MiB scoped default; TODO(synk): v7x-aware


# ----------------------------- Pallas kernels ------------------------------

def _make_gin_stack_kernel(num_layers, apply_relu):
    """Fused stack of GINConv(MLP) layers: h <- MLP(h + A @ h) per layer.

    MLP = fc1 -> relu -> fc2 -> relu -> fc3 (BatchNorm folded into fc1/fc2).
    If apply_relu, a relu follows each GIN layer (Net2's gc1..gc3).
    A stays resident in VMEM; intermediates never touch HBM.
    """
    def kernel(x_ref, a_ref, *rest):
        param_refs = rest[:-1]
        out_ref = rest[-1]
        a = a_ref[...]                      # (N, N) bf16, 0/1 adjacency (exact)
        h = x_ref[...]                      # (N, D) f32
        for l in range(num_layers):
            w1 = param_refs[6 * l + 0][...]
            b1 = param_refs[6 * l + 1][...]
            w2 = param_refs[6 * l + 2][...]
            b2 = param_refs[6 * l + 3][...]
            w3 = param_refs[6 * l + 4][...]
            b3 = param_refs[6 * l + 5][...]
            # GIN aggregation (eps=0, sum): bf16 MXU path, f32 accumulation.
            agg = h + jnp.dot(a, h.astype(jnp.bfloat16),
                              preferred_element_type=jnp.float32)
            z = jnp.dot(agg, w1, preferred_element_type=jnp.float32) + b1
            z = jnp.maximum(z, 0.0)
            z = jnp.dot(z, w2, preferred_element_type=jnp.float32) + b2
            z = jnp.maximum(z, 0.0)
            z = jnp.dot(z, w3, preferred_element_type=jnp.float32) + b3
            if apply_relu:
                z = jnp.maximum(z, 0.0)
            h = z
        out_ref[...] = h
    return kernel


@partial(jax.jit, static_argnames=("apply_relu",))
def gin_stack(x, A_bf16, layer_params, apply_relu=False):
    """Run a fused stack of GIN+MLP layers in a single pallas_call."""
    n, din = x.shape
    dout = layer_params[-1]["w3"].shape[1]
    flat = []
    flops = 0
    bytes_accessed = x.size * 4 + A_bf16.size * 2 + n * dout * 4
    d_in = din
    for p in layer_params:
        flat += [p["w1"], p["b1"], p["w2"], p["b2"], p["w3"], p["b3"]]
        dh = p["w1"].shape[1]
        do = p["w3"].shape[1]
        flops += 2 * n * n * d_in + 2 * n * (d_in * dh + dh * dh + dh * do)
        bytes_accessed += 4 * (p["w1"].size + p["b1"].size + p["w2"].size
                               + p["b2"].size + p["w3"].size + p["b3"].size)
        d_in = do
    kernel = _make_gin_stack_kernel(len(layer_params), apply_relu)
    return pl.pallas_call(
        kernel,
        out_shape=jax.ShapeDtypeStruct((n, dout), jnp.float32),
        compiler_params=pltpu.CompilerParams(vmem_limit_bytes=_VMEM_LIMIT),
        cost_estimate=pl.CostEstimate(flops=int(flops), transcendentals=0,
                                      bytes_accessed=int(bytes_accessed)),
    )(x, A_bf16, *flat)


def _make_pool_fused_kernel(compute_entropy):
    """Fused MEWISPool front-end.

    Computes (in one kernel, A resident in VMEM):
      entropies  = -P log P of the per-graph softmax of ||deg*x^2 - 2x(Ax) + A x^2||
      p          = sigmoid(gc3(gc2(gc1(entropies))))          (pool GIN stack)
      loss       = sum(e) - e^T p + p^T A p
    If compute_entropy=False, the first input is the entropy vector directly
    (zero-edge branch of the reference).
    """
    def kernel(x_ref, a_ref, oh_ref, *rest):
        param_refs = rest[:18]
        ent_ref, prob_ref, loss_ref = rest[18], rest[19], rest[20]
        a = a_ref[...]                          # (N, N) bf16
        if compute_entropy:
            x = x_ref[...]                      # (N, D) f32
            oh = oh_ref[...]                    # (N, G) node->graph one-hot, f32
            deg = jnp.sum(a.astype(jnp.float32), axis=1, keepdims=True)   # (N,1)
            x2 = x * x
            ax = jnp.dot(a, x.astype(jnp.bfloat16),
                         preferred_element_type=jnp.float32)
            ax2 = jnp.dot(a, x2.astype(jnp.bfloat16),
                          preferred_element_type=jnp.float32)
            v = deg * x2 - 2.0 * x * ax + ax2
            vnorm = jnp.sqrt(jnp.sum(v * v, axis=1, keepdims=True))       # (N,1)
            # per-graph softmax over vnorm (node axis = sublanes, graphs = lanes)
            gmax = jnp.max(jnp.where(oh > 0.0, vnorm, -jnp.inf),
                           axis=0, keepdims=True)                         # (1,G)
            node_max = jnp.sum(oh * gmax, axis=1, keepdims=True)          # (N,1)
            ev = jnp.exp(vnorm - node_max)
            gden = jnp.sum(oh * ev, axis=0, keepdims=True)                # (1,G)
            node_den = jnp.sum(oh * gden, axis=1, keepdims=True)          # (N,1)
            P = ev / node_den
            P = jnp.where(P == 0.0, jnp.float32(1.0), P)
            ent = -P * jnp.log(P)
        else:
            ent = x_ref[...]                    # (N, 1) entropies passed in
        ent_ref[...] = ent

        # pool GIN stack gc1 -> gc2 -> gc3 (no inter-layer relu, no BatchNorm)
        h = ent
        for l in range(3):
            w1 = param_refs[6 * l + 0][...]
            b1 = param_refs[6 * l + 1][...]
            w2 = param_refs[6 * l + 2][...]
            b2 = param_refs[6 * l + 3][...]
            w3 = param_refs[6 * l + 4][...]
            b3 = param_refs[6 * l + 5][...]
            agg = h + jnp.dot(a, h.astype(jnp.bfloat16),
                              preferred_element_type=jnp.float32)
            z = jnp.maximum(jnp.dot(agg, w1, preferred_element_type=jnp.float32) + b1, 0.0)
            z = jnp.maximum(jnp.dot(z, w2, preferred_element_type=jnp.float32) + b2, 0.0)
            h = jnp.dot(z, w3, preferred_element_type=jnp.float32) + b3
        prob = 1.0 / (1.0 + jnp.exp(-h))        # sigmoid, in-kernel
        prob_ref[...] = prob

        # loss = sum(e) - e^T p + p^T A p
        ap = jnp.dot(a, prob.astype(jnp.bfloat16),
                     preferred_element_type=jnp.float32)
        gamma = jnp.sum(ent, axis=(0, 1), keepdims=True)
        t1 = -jnp.sum(ent * prob, axis=(0, 1), keepdims=True)
        t2 = jnp.sum(prob * ap, axis=(0, 1), keepdims=True)
        loss_ref[...] = gamma + t1 + t2
    return kernel


@partial(jax.jit, static_argnames=("compute_entropy",))
def pool_fused(x_or_ent, A_bf16, onehotT, pool_params, compute_entropy=True):
    n = A_bf16.shape[0]
    flat = []
    for name in ("gc1", "gc2", "gc3"):
        p = pool_params[name]
        flat += [p["w1"], p["b1"], p["w2"], p["b2"], p["w3"], p["b3"]]
    kernel = _make_pool_fused_kernel(compute_entropy)
    return pl.pallas_call(
        kernel,
        out_shape=(jax.ShapeDtypeStruct((n, 1), jnp.float32),   # entropies
                   jax.ShapeDtypeStruct((n, 1), jnp.float32),   # probabilities
                   jax.ShapeDtypeStruct((1, 1), jnp.float32)),  # loss
        compiler_params=pltpu.CompilerParams(vmem_limit_bytes=_VMEM_LIMIT),
    )(x_or_ent, A_bf16, onehotT, *flat)


def _tail_kernel(ar_ref, a_ref, xp_ref, h_ref, m2_ref, mp_ref, nd_ref,
                 w1_ref, b1_ref, w2_ref, b2_ref, w3_ref, b3_ref,
                 f1w_ref, f1b_ref, f2w_ref, f2b_ref,
                 logp_ref, adj_ref):
    """Fused tail: pooled adjacency + gc4 GIN + both readouts + classification head."""
    ar = ar_ref[...]                             # (k, N) bf16 = A[mewis, :]
    a = a_ref[...]                               # (N, N) bf16
    # Pooled submatrices only (A symmetric): A2m = Ar Ar^T, A3m = (Ar A) Ar^T.
    dn = (((1,), (1,)), ((), ()))                # contract both operands on N axis
    a2m = jax.lax.dot_general(ar, ar, dn, preferred_element_type=jnp.float32)
    ara = jnp.dot(ar, a, preferred_element_type=jnp.float32)
    a3m = jax.lax.dot_general(ara.astype(jnp.bfloat16), ar, dn,
                              preferred_element_type=jnp.float32)
    adj = nd_ref[...] * jnp.minimum(jnp.maximum(a2m + a3m, 0.0), 1.0)   # (k,k) 0/1
    adj_ref[...] = adj
    ap_bf = jnp.where(adj > 0.0, 1.0, 0.0).astype(jnp.bfloat16)

    # gc4: GIN (eps=0, sum) + MLP (BatchNorm folded), NO trailing relu (matches Net2).
    xp = xp_ref[...]                             # (k, D) f32 = h[mewis]
    agg = xp + jnp.dot(ap_bf, xp.astype(jnp.bfloat16),
                       preferred_element_type=jnp.float32)
    z = jnp.maximum(jnp.dot(agg, w1_ref[...], preferred_element_type=jnp.float32)
                    + b1_ref[...], 0.0)
    z = jnp.maximum(jnp.dot(z, w2_ref[...], preferred_element_type=jnp.float32)
                    + b2_ref[...], 0.0)
    h4 = jnp.dot(z, w3_ref[...], preferred_element_type=jnp.float32) + b3_ref[...]

    # per-graph mean readouts (masks pre-normalized by node counts)
    readout = (jnp.dot(m2_ref[...], h_ref[...], preferred_element_type=jnp.float32)
               + jnp.dot(mp_ref[...], h4, preferred_element_type=jnp.float32))

    # head: fc1 -> relu -> fc2 -> log_softmax
    o = jnp.maximum(jnp.dot(readout, f1w_ref[...], preferred_element_type=jnp.float32)
                    + f1b_ref[...], 0.0)
    o = jnp.dot(o, f2w_ref[...], preferred_element_type=jnp.float32) + f2b_ref[...]
    m = jnp.max(o, axis=-1, keepdims=True)
    lse = m + jnp.log(jnp.sum(jnp.exp(o - m), axis=-1, keepdims=True))
    logp_ref[...] = o - lse


@jax.jit
def tail_fused(Ar, A_bf16, x_pooled, h, mask2n, maskpn, non_diag,
               gc4, fc1w, fc1b, fc2w, fc2b):
    g = mask2n.shape[0]
    k = Ar.shape[0]
    c = fc2w.shape[1]
    return pl.pallas_call(
        _tail_kernel,
        out_shape=(jax.ShapeDtypeStruct((g, c), jnp.float32),   # log-probs
                   jax.ShapeDtypeStruct((k, k), jnp.float32)),  # pooled adjacency
        compiler_params=pltpu.CompilerParams(vmem_limit_bytes=_VMEM_LIMIT),
    )(Ar, A_bf16, x_pooled, h, mask2n, maskpn, non_diag,
      gc4["w1"], gc4["b1"], gc4["w2"], gc4["b2"], gc4["w3"], gc4["b3"],
      fc1w, fc1b, fc2w, fc2b)


# --------------------------- parameter initializers ------------------------

def init_linear(key, din, dout):
    kw, kb = jax.random.split(key)
    bound = 1.0 / np.sqrt(din)
    w = jax.random.uniform(kw, (din, dout), jnp.float32, -bound, bound)
    b = jax.random.uniform(kb, (1, dout), jnp.float32, -bound, bound)
    return w, b


def init_mlp(key, din, dh, dout, enhance):
    k1, k2, k3 = jax.random.split(key, 3)
    w1, b1 = init_linear(k1, din, dh)
    w2, b2 = init_linear(k2, dh, dh)
    w3, b3 = init_linear(k3, dh, dout)
    if enhance:
        # BatchNorm1d eval mode, default running stats (mean=0, var=1, gamma=1,
        # beta=0): y = x / sqrt(1 + 1e-5). Fold into fc1 / fc2; Dropout is identity.
        s = np.float32(1.0 / np.sqrt(1.0 + 1e-5))
        w1, b1 = w1 * s, b1 * s
        w2, b2 = w2 * s, b2 * s
    return dict(w1=w1, b1=b1, w2=w2, b2=b2, w3=w3, b3=b3)


def init_net2(key, input_dim, hidden_dim, num_classes):
    keys = jax.random.split(key, 9)
    return {
        "gc1": init_mlp(keys[0], input_dim, hidden_dim, hidden_dim, True),
        "gc2": init_mlp(keys[1], hidden_dim, hidden_dim, hidden_dim, True),
        "gc3": init_mlp(keys[2], hidden_dim, hidden_dim, hidden_dim, True),
        "gc4": init_mlp(keys[3], hidden_dim, hidden_dim, hidden_dim, True),
        "pool": {
            "gc1": init_mlp(keys[4], 1, hidden_dim, hidden_dim, False),
            "gc2": init_mlp(keys[5], hidden_dim, hidden_dim, hidden_dim, False),
            "gc3": init_mlp(keys[6], hidden_dim, hidden_dim, 1, False),
        },
        "fc1": init_linear(keys[7], hidden_dim, hidden_dim),
        "fc2": init_linear(keys[8], hidden_dim, num_classes),
    }


# ------------------------------- forward pass ------------------------------

def _greedy_mewis(ent_np, prob_np, A_np, threshold):
    """Greedy conditional-expectation node selection (host, numpy, closed form).

    TODO(synk): inherently sequential, data-dependent loop with Python sets; kept on
    host — candidate losses are gamma - e.s + s'As with numpy, so no kernel launch
    or device sync occurs inside the loop.
    """
    gamma = float(ent_np.sum())
    dummy = prob_np.copy()
    selected, rejected = set(), set()
    order = np.argsort(-prob_np[:, 0])
    for node_index in order:
        node_index = int(node_index)
        neighbors = np.where(A_np[node_index] == 1)[0]
        if len(neighbors) == 0:
            selected.add(node_index)
            continue
        if node_index not in rejected and node_index not in selected:
            s = dummy.copy()
            s[node_index] = 1.0
            s[neighbors] = 0.0
            sv = s[:, 0]
            cand = gamma - float(ent_np[:, 0] @ sv) + float(sv @ (A_np @ sv))
            if cand <= threshold:
                selected.add(node_index)
                rejected.update(int(t) for t in neighbors.tolist())
                dummy[node_index] = 1.0
                dummy[neighbors] = 0.0
    return sorted(selected)


def net2_forward(x, edge_index, batch, params):
    n = x.shape[0]
    num_edges = edge_index.shape[1]
    batch_np = np.asarray(batch)
    num_graphs = int(batch_np.max()) + 1

    # Dense 0/1 adjacency kept on device only in bf16 (exact); start its host
    # transfer immediately so it overlaps the GIN stack.
    A_bf16 = jnp.zeros((n, n), jnp.bfloat16).at[edge_index[0], edge_index[1]].set(1.0)
    if hasattr(A_bf16, "copy_to_host_async"):
        A_bf16.copy_to_host_async()

    # gc1 -> relu -> gc2 -> relu -> gc3 -> relu, fused in ONE pallas_call.
    h = gin_stack(x, A_bf16, (params["gc1"], params["gc2"], params["gc3"]),
                  apply_relu=True)

    # node -> graph one-hot, (N, G), built on host (batch is host data).
    onehotT_np = (batch_np[:, None] == np.arange(num_graphs)[None, :]).astype(np.float32)
    onehotT = jnp.asarray(onehotT_np)

    # Fused MEWIS pool front-end: entropy + pool GIN stack + sigmoid + loss, ONE call.
    if num_edges != 0:
        entropies, probabilities, loss_dev = pool_fused(
            h, A_bf16, onehotT, params["pool"], compute_entropy=True)
    else:
        # Matches the reference exactly (norm/norm; NaN for all-zero rows).
        norm = jnp.linalg.norm(h, axis=1, keepdims=True)
        ent_in = norm / norm
        entropies, probabilities, loss_dev = pool_fused(
            ent_in, A_bf16, onehotT, params["pool"], compute_entropy=False)

    # Single batched device->host pull for everything the greedy loop needs.
    ent_np, prob_np, loss_np, A_host = jax.device_get(
        (entropies, probabilities, loss_dev, A_bf16))
    A_np = np.asarray(A_host, dtype=np.float32)     # bf16 0/1 -> f32, exact
    threshold = float(loss_np[0, 0])

    mewis = _greedy_mewis(ent_np, prob_np, A_np, threshold)
    k = len(mewis)
    idx = jnp.asarray(np.asarray(mewis, dtype=np.int32))

    # Host-side mask construction for the fused tail kernel.
    batch_pooled_np = batch_np[np.asarray(mewis)]
    m2 = onehotT_np.T                                             # (G, N)
    mask2n = jnp.asarray(m2 / np.maximum(m2.sum(axis=1, keepdims=True), 1.0))
    mp = (batch_pooled_np[None, :] == np.arange(num_graphs)[:, None]).astype(np.float32)
    # TODO(synk): if pooling drops every node of a graph the PyTorch reference errors
    # (shape mismatch); here that graph's pooled readout row is zero instead.
    maskpn = jnp.asarray(mp / np.maximum(mp.sum(axis=1, keepdims=True), 1.0))
    non_diag = jnp.asarray((1.0 - np.eye(k)).astype(np.float32))

    # Row gathers only (sublane-friendly); no column gather of A.
    Ar = A_bf16[idx, :]                # (k, N)
    x_pooled = h[idx]                  # (k, D)

    # Fused tail: pooled adjacency + gc4 + readouts + head in ONE pallas_call.
    logp, adj_pooled = tail_fused(Ar, A_bf16, x_pooled, h, mask2n, maskpn, non_diag,
                                  params["gc4"], params["fc1"][0], params["fc1"][1],
                                  params["fc2"][0], params["fc2"][1])
    # adj_pooled (k,k) is available if a caller needs edge_index_pooled (np.where > 0).
    loss1 = loss_dev[0, 0]
    return logp, loss1, mewis


# ----------------------------------- main -----------------------------------

if __name__ == "__main__":
    key = jax.random.PRNGKey(0)
    k_param, k_x = jax.random.split(key)

    input_dim, hidden_dim, num_classes = 4, 32, 3
    params = init_net2(k_param, input_dim, hidden_dim, num_classes)

    # 2 graphs, 5 nodes each (nodes 4 and 9 are isolated); symmetric edge list.
    src = [0, 1, 1, 2, 2, 3, 3, 0, 5, 6, 6, 7, 7, 8, 8, 5]
    dst = [1, 0, 2, 1, 3, 2, 0, 3, 6, 5, 7, 6, 8, 7, 5, 8]
    edge_index = jnp.asarray(np.stack([src, dst], axis=0), dtype=jnp.int32)
    batch = jnp.asarray([0, 0, 0, 0, 0, 1, 1, 1, 1, 1], dtype=jnp.int32)
    x = jax.random.normal(k_x, (10, input_dim), dtype=jnp.float32)

    logp, loss1, mewis = net2_forward(x, edge_index, batch, params)
    jax.block_until_ready((logp, loss1))

    assert logp.shape == (2, num_classes)
    assert np.all(np.isfinite(np.asarray(logp)))
    assert np.isfinite(float(loss1))
    print("KERNEL_OK")
</pallas_src>

<mosaic_0001>
module attributes {stable_mosaic.version = 11 : i64} {
  func.func @kernel(%arg0: memref<10x4xf32, #tpu.memory_space<vmem>>, %arg1: memref<10x10xbf16, #tpu.memory_space<vmem>>, %arg2: memref<4x32xf32, #tpu.memory_space<vmem>>, %arg3: memref<1x32xf32, #tpu.memory_space<vmem>>, %arg4: memref<32x32xf32, #tpu.memory_space<vmem>>, %arg5: memref<1x32xf32, #tpu.memory_space<vmem>>, %arg6: memref<32x32xf32, #tpu.memory_space<vmem>>, %arg7: memref<1x32xf32, #tpu.memory_space<vmem>>, %arg8: memref<32x32xf32, #tpu.memory_space<vmem>>, %arg9: memref<1x32xf32, #tpu.memory_space<vmem>>, %arg10: memref<32x32xf32, #tpu.memory_space<vmem>>, %arg11: memref<1x32xf32, #tpu.memory_space<vmem>>, %arg12: memref<32x32xf32, #tpu.memory_space<vmem>>, %arg13: memref<1x32xf32, #tpu.memory_space<vmem>>, %arg14: memref<32x32xf32, #tpu.memory_space<vmem>>, %arg15: memref<1x32xf32, #tpu.memory_space<vmem>>, %arg16: memref<32x32xf32, #tpu.memory_space<vmem>>, %arg17: memref<1x32xf32, #tpu.memory_space<vmem>>, %arg18: memref<32x32xf32, #tpu.memory_space<vmem>>, %arg19: memref<1x32xf32, #tpu.memory_space<vmem>>, %arg20: memref<10x32xf32, #tpu.memory_space<vmem>>) attributes {dimension_semantics = [], scalar_prefetch = 0 : i64, scratch_operands = 0 : i64, tpu.core_type = #tpu.core_type<tc>} {
    %c0 = arith.constant 0 : index
    %c0_0 = arith.constant 0 : index
    %0 = vector.load %arg1[%c0, %c0_0] : memref<10x10xbf16, #tpu.memory_space<vmem>>, vector<10x10xbf16>
    %c0_1 = arith.constant 0 : index
    %c0_2 = arith.constant 0 : index
    %1 = vector.load %arg0[%c0_1, %c0_2] : memref<10x4xf32, #tpu.memory_space<vmem>>, vector<10x4xf32>
    %c0_3 = arith.constant 0 : index
    %c0_4 = arith.constant 0 : index
    %2 = vector.load %arg2[%c0_3, %c0_4] : memref<4x32xf32, #tpu.memory_space<vmem>>, vector<4x32xf32>
    %c0_5 = arith.constant 0 : index
    %c0_6 = arith.constant 0 : index
    %3 = vector.load %arg3[%c0_5, %c0_6] : memref<1x32xf32, #tpu.memory_space<vmem>>, vector<1x32xf32>
    %c0_7 = arith.constant 0 : index
    %c0_8 = arith.constant 0 : index
    %4 = vector.load %arg4[%c0_7, %c0_8] : memref<32x32xf32, #tpu.memory_space<vmem>>, vector<32x32xf32>
    %c0_9 = arith.constant 0 : index
    %c0_10 = arith.constant 0 : index
    %5 = vector.load %arg5[%c0_9, %c0_10] : memref<1x32xf32, #tpu.memory_space<vmem>>, vector<1x32xf32>
    %c0_11 = arith.constant 0 : index
    %c0_12 = arith.constant 0 : index
    %6 = vector.load %arg6[%c0_11, %c0_12] : memref<32x32xf32, #tpu.memory_space<vmem>>, vector<32x32xf32>
    %c0_13 = arith.constant 0 : index
    %c0_14 = arith.constant 0 : index
    %7 = vector.load %arg7[%c0_13, %c0_14] : memref<1x32xf32, #tpu.memory_space<vmem>>, vector<1x32xf32>
    %8 = arith.truncf %1 : vector<10x4xf32> to vector<10x4xbf16>
    %cst = arith.constant dense<0.000000e+00> : vector<10x4xf32>
    %9 = tpu.matmul %0, %8, %cst {dimension_numbers = #tpu.dot_dimension_numbers<[1], [0], [0], [1], [0, 0, 1, 1], [], []>} : vector<10x10xbf16>, vector<10x4xbf16>, vector<10x4xf32> -> vector<10x4xf32>
    %10 = arith.addf %1, %9 : vector<10x4xf32>
    %cst_15 = arith.constant dense<0.000000e+00> : vector<10x32xf32>
    %11 = tpu.matmul %10, %2, %cst_15 {dimension_numbers = #tpu.dot_dimension_numbers<[1], [0], [0], [1], [0, 0, 1, 1], [], []>} : vector<10x4xf32>, vector<4x32xf32>, vector<10x32xf32> -> vector<10x32xf32>
    %12 = vector.broadcast %3 : vector<1x32xf32> to vector<10x32xf32>
    %13 = arith.addf %11, %12 : vector<10x32xf32>
    %cst_16 = arith.constant 0.000000e+00 : f32
    %14 = vector.broadcast %cst_16 : f32 to vector<10x32xf32>
    %15 = arith.maximumf %13, %14 : vector<10x32xf32>
    %cst_17 = arith.constant dense<0.000000e+00> : vector<10x32xf32>
    %16 = tpu.matmul %15, %4, %cst_17 {dimension_numbers = #tpu.dot_dimension_numbers<[1], [0], [0], [1], [0, 0, 1, 1], [], []>} : vector<10x32xf32>, vector<32x32xf32>, vector<10x32xf32> -> vector<10x32xf32>
    %17 = vector.broadcast %5 : vector<1x32xf32> to vector<10x32xf32>
    %18 = arith.addf %16, %17 : vector<10x32xf32>
    %cst_18 = arith.constant 0.000000e+00 : f32
    %19 = vector.broadcast %cst_18 : f32 to vector<10x32xf32>
    %20 = arith.maximumf %18, %19 : vector<10x32xf32>
    %cst_19 = arith.constant dense<0.000000e+00> : vector<10x32xf32>
    %21 = tpu.matmul %20, %6, %cst_19 {dimension_numbers = #tpu.dot_dimension_numbers<[1], [0], [0], [1], [0, 0, 1, 1], [], []>} : vector<10x32xf32>, vector<32x32xf32>, vector<10x32xf32> -> vector<10x32xf32>
    %22 = vector.broadcast %7 : vector<1x32xf32> to vector<10x32xf32>
    %23 = arith.addf %21, %22 : vector<10x32xf32>
    %cst_20 = arith.constant 0.000000e+00 : f32
    %24 = vector.broadcast %cst_20 : f32 to vector<10x32xf32>
    %25 = arith.maximumf %23, %24 : vector<10x32xf32>
    %c0_21 = arith.constant 0 : index
    %c0_22 = arith.constant 0 : index
    %26 = vector.load %arg8[%c0_21, %c0_22] : memref<32x32xf32, #tpu.memory_space<vmem>>, vector<32x32xf32>
    %c0_23 = arith.constant 0 : index
    %c0_24 = arith.constant 0 : index
    %27 = vector.load %arg9[%c0_23, %c0_24] : memref<1x32xf32, #tpu.memory_space<vmem>>, vector<1x32xf32>
    %c0_25 = arith.constant 0 : index
    %c0_26 = arith.constant 0 : index
    %28 = vector.load %arg10[%c0_25, %c0_26] : memref<32x32xf32, #tpu.memory_space<vmem>>, vector<32x32xf32>
    %c0_27 = arith.constant 0 : index
    %c0_28 = arith.constant 0 : index
    %29 = vector.load %arg11[%c0_27, %c0_28] : memref<1x32xf32, #tpu.memory_space<vmem>>, vector<1x32xf32>
    %c0_29 = arith.constant 0 : index
    %c0_30 = arith.constant 0 : index
    %30 = vector.load %arg12[%c0_29, %c0_30] : memref<32x32xf32, #tpu.memory_space<vmem>>, vector<32x32xf32>
    %c0_31 = arith.constant 0 : index
    %c0_32 = arith.constant 0 : index
    %31 = vector.load %arg13[%c0_31, %c0_32] : memref<1x32xf32, #tpu.memory_space<vmem>>, vector<1x32xf32>
    %32 = arith.truncf %25 : vector<10x32xf32> to vector<10x32xbf16>
    %cst_33 = arith.constant dense<0.000000e+00> : vector<10x32xf32>
    %33 = tpu.matmul %0, %32, %cst_33 {dimension_numbers = #tpu.dot_dimension_numbers<[1], [0], [0], [1], [0, 0, 1, 1], [], []>} : vector<10x10xbf16>, vector<10x32xbf16>, vector<10x32xf32> -> vector<10x32xf32>
    %34 = arith.addf %25, %33 : vector<10x32xf32>
    %cst_34 = arith.constant dense<0.000000e+00> : vector<10x32xf32>
    %35 = tpu.matmul %34, %26, %cst_34 {dimension_numbers = #tpu.dot_dimension_numbers<[1], [0], [0], [1], [0, 0, 1, 1], [], []>} : vector<10x32xf32>, vector<32x32xf32>, vector<10x32xf32> -> vector<10x32xf32>
    %36 = vector.broadcast %27 : vector<1x32xf32> to vector<10x32xf32>
    %37 = arith.addf %35, %36 : vector<10x32xf32>
    %cst_35 = arith.constant 0.000000e+00 : f32
    %38 = vector.broadcast %cst_35 : f32 to vector<10x32xf32>
    %39 = arith.maximumf %37, %38 : vector<10x32xf32>
    %cst_36 = arith.constant dense<0.000000e+00> : vector<10x32xf32>
    %40 = tpu.matmul %39, %28, %cst_36 {dimension_numbers = #tpu.dot_dimension_numbers<[1], [0], [0], [1], [0, 0, 1, 1], [], []>} : vector<10x32xf32>, vector<32x32xf32>, vector<10x32xf32> -> vector<10x32xf32>
    %41 = vector.broadcast %29 : vector<1x32xf32> to vector<10x32xf32>
    %42 = arith.addf %40, %41 : vector<10x32xf32>
    %cst_37 = arith.constant 0.000000e+00 : f32
    %43 = vector.broadcast %cst_37 : f32 to vector<10x32xf32>
    %44 = arith.maximumf %42, %43 : vector<10x32xf32>
    %cst_38 = arith.constant dense<0.000000e+00> : vector<10x32xf32>
    %45 = tpu.matmul %44, %30, %cst_38 {dimension_numbers = #tpu.dot_dimension_numbers<[1], [0], [0], [1], [0, 0, 1, 1], [], []>} : vector<10x32xf32>, vector<32x32xf32>, vector<10x32xf32> -> vector<10x32xf32>
    %46 = vector.broadcast %31 : vector<1x32xf32> to vector<10x32xf32>
    %47 = arith.addf %45, %46 : vector<10x32xf32>
    %cst_39 = arith.constant 0.000000e+00 : f32
    %48 = vector.broadcast %cst_39 : f32 to vector<10x32xf32>
    %49 = arith.maximumf %47, %48 : vector<10x32xf32>
    %c0_40 = arith.constant 0 : index
    %c0_41 = arith.constant 0 : index
    %50 = vector.load %arg14[%c0_40, %c0_41] : memref<32x32xf32, #tpu.memory_space<vmem>>, vector<32x32xf32>
    %c0_42 = arith.constant 0 : index
    %c0_43 = arith.constant 0 : index
    %51 = vector.load %arg15[%c0_42, %c0_43] : memref<1x32xf32, #tpu.memory_space<vmem>>, vector<1x32xf32>
    %c0_44 = arith.constant 0 : index
    %c0_45 = arith.constant 0 : index
    %52 = vector.load %arg16[%c0_44, %c0_45] : memref<32x32xf32, #tpu.memory_space<vmem>>, vector<32x32xf32>
    %c0_46 = arith.constant 0 : index
    %c0_47 = arith.constant 0 : index
    %53 = vector.load %arg17[%c0_46, %c0_47] : memref<1x32xf32, #tpu.memory_space<vmem>>, vector<1x32xf32>
    %c0_48 = arith.constant 0 : index
    %c0_49 = arith.constant 0 : index
    %54 = vector.load %arg18[%c0_48, %c0_49] : memref<32x32xf32, #tpu.memory_space<vmem>>, vector<32x32xf32>
    %c0_50 = arith.constant 0 : index
    %c0_51 = arith.constant 0 : index
    %55 = vector.load %arg19[%c0_50, %c0_51] : memref<1x32xf32, #tpu.memory_space<vmem>>, vector<1x32xf32>
    %56 = arith.truncf %49 : vector<10x32xf32> to vector<10x32xbf16>
    %cst_52 = arith.constant dense<0.000000e+00> : vector<10x32xf32>
    %57 = tpu.matmul %0, %56, %cst_52 {dimension_numbers = #tpu.dot_dimension_numbers<[1], [0], [0], [1], [0, 0, 1, 1], [], []>} : vector<10x10xbf16>, vector<10x32xbf16>, vector<10x32xf32> -> vector<10x32xf32>
    %58 = arith.addf %49, %57 : vector<10x32xf32>
    %cst_53 = arith.constant dense<0.000000e+00> : vector<10x32xf32>
    %59 = tpu.matmul %58, %50, %cst_53 {dimension_numbers = #tpu.dot_dimension_numbers<[1], [0], [0], [1], [0, 0, 1, 1], [], []>} : vector<10x32xf32>, vector<32x32xf32>, vector<10x32xf32> -> vector<10x32xf32>
    %60 = vector.broadcast %51 : vector<1x32xf32> to vector<10x32xf32>
    %61 = arith.addf %59, %60 : vector<10x32xf32>
    %cst_54 = arith.constant 0.000000e+00 : f32
    %62 = vector.broadcast %cst_54 : f32 to vector<10x32xf32>
    %63 = arith.maximumf %61, %62 : vector<10x32xf32>
    %cst_55 = arith.constant dense<0.000000e+00> : vector<10x32xf32>
    %64 = tpu.matmul %63, %52, %cst_55 {dimension_numbers = #tpu.dot_dimension_numbers<[1], [0], [0], [1], [0, 0, 1, 1], [], []>} : vector<10x32xf32>, vector<32x32xf32>, vector<10x32xf32> -> vector<10x32xf32>
    %65 = vector.broadcast %53 : vector<1x32xf32> to vector<10x32xf32>
    %66 = arith.addf %64, %65 : vector<10x32xf32>
    %cst_56 = arith.constant 0.000000e+00 : f32
    %67 = vector.broadcast %cst_56 : f32 to vector<10x32xf32>
    %68 = arith.maximumf %66, %67 : vector<10x32xf32>
    %cst_57 = arith.constant dense<0.000000e+00> : vector<10x32xf32>
    %69 = tpu.matmul %68, %54, %cst_57 {dimension_numbers = #tpu.dot_dimension_numbers<[1], [0], [0], [1], [0, 0, 1, 1], [], []>} : vector<10x32xf32>, vector<32x32xf32>, vector<10x32xf32> -> vector<10x32xf32>
    %70 = vector.broadcast %55 : vector<1x32xf32> to vector<10x32xf32>
    %71 = arith.addf %69, %70 : vector<10x32xf32>
    %cst_58 = arith.constant 0.000000e+00 : f32
    %72 = vector.broadcast %cst_58 : f32 to vector<10x32xf32>
    %73 = arith.maximumf %71, %72 : vector<10x32xf32>
    %c0_59 = arith.constant 0 : index
    %c0_60 = arith.constant 0 : index
    %74 = vector.load %arg20[%c0_59, %c0_60] : memref<10x32xf32, #tpu.memory_space<vmem>>, vector<10x32xf32>
    tpu.vector_store %arg20[%c0_59, %c0_60], %73 {strides = array<i32>} : memref<10x32xf32, #tpu.memory_space<vmem>>, vector<10x32xf32>,
    return
  }
}

</mosaic_0001>

<bundles_post_ra>
// kernel: gin_stack.1
= control target key start
LH: loop header
LB: loop body
LE: loop exit
PB: predicated region body
PF: predicated region fallthrough
CT: control target
= control target key end

     0   :  { %s2277_s0 = inlined_call_operand.vmem [shape: f32[10,4], index: 0, kind: input, shape index: {}]   ;;  %s2278_s1 = inlined_call_operand.hbm [shape: bf16[10,10], index: 1, kind: input, shape index: {}]   ;;  %s2279_s2 = inlined_call_operand.hbm [shape: f32[4,32], index: 2, kind: input, shape index: {}]   ;;  %s2280_s3 = inlined_call_operand.vmem [shape: f32[1,32], index: 3, kind: input, shape index: {}]   ;;  %s2281_s4 = inlined_call_operand.vmem [shape: f32[32,32], index: 4, kind: input, shape index: {}]   ;;  %s2282_s5 = inlined_call_operand.hbm [shape: f32[1,32], index: 5, kind: input, shape index: {}]   ;;  %s2283_s6 = inlined_call_operand.hbm [shape: f32[32,32], index: 6, kind: input, shape index: {}]   ;;  %s2284_s7 = inlined_call_operand.hbm [shape: f32[1,32], index: 7, kind: input, shape index: {}]   ;;  %s2285_s8 = inlined_call_operand.hbm [shape: f32[32,32], index: 8, kind: input, shape index: {}]   ;;  %s2286_s9 = inlined_call_operand.hbm [shape: f32[1,32], index: 9, kind: input, shape index: {}]   ;;  %s2287_s10 = inlined_call_operand.vmem [shape: f32[32,32], index: 10, kind: input, shape index: {}]   ;;  %s2288_s11 = inlined_call_operand.hbm [shape: f32[1,32], index: 11, kind: input, shape index: {}]   ;;  %s2289_s12 = inlined_call_operand.hbm [shape: f32[32,32], index: 12, kind: input, shape index: {}]   ;;  %s2290_s13 = inlined_call_operand.hbm [shape: f32[1,32], index: 13, kind: input, shape index: {}]   ;;  %s2291_s14 = inlined_call_operand.hbm [shape: f32[32,32], index: 14, kind: input, shape index: {}]   ;;  %s2292_s15 = inlined_call_operand.vmem [shape: f32[1,32], index: 15, kind: input, shape index: {}]   ;;  %s2293_s16 = inlined_call_operand.hbm [shape: f32[32,32], index: 16, kind: input, shape index: {}]   ;;  %s2294_s17 = inlined_call_operand.vmem [shape: f32[1,32], index: 17, kind: input, shape index: {}]   ;;  %s2295_s18 = inlined_call_operand.hbm [shape: f32[32,32], index: 18, kind: input, shape index: {}]   ;;  %s2296_s19 = inlined_call_operand.vmem [shape: f32[1,32], index: 19, kind: input, shape index: {}]   ;;  %s2297_s20 = inlined_call_operand.hbm [shape: f32[10,32], index: 20, kind: output, shape index: {}]  }
   0x1   :  { %2303 = sst [smem:[#allocation32_spill]] %s2277_s0 }
   0x2   :  { %2304 = sst [smem:[#allocation33_spill]] %s2278_s1 }
   0x3   :  { %2305 = sst [smem:[#allocation34_spill]] %s2279_s2 }
   0x4   :  { %2306 = sst [smem:[#allocation35_spill]] %s2280_s3 }
   0x5   :  { %2307 = sst [smem:[#allocation36_spill]] %s2281_s4 }
   0x6   :  { %2308 = sst [smem:[#allocation37_spill]] %s2297_s20 }
   0x7   :  { %25 = vsyncpa [#allocation3], 0 }
   0x8   :  { %26 = vsyncpa [#allocation6], 0 }
   0x9   :  { %27 = vsyncpa [#allocation9], 0 }
   0xa   :  { %28 = vsyncpa [#allocation12], 0 }
   0xb   :  { %29 = vsyncpa [#allocation15], 0 }
   0xc   :  { %30 = vsyncpa [#allocation18], 0 }
   0xd   :  { %31 = vsyncpa [#allocation21], 0 }
   0xe   :  { %32 = vsyncpa [#allocation4], 0  ;;  %s1870_s1 = smov [#allocation5]   ;;  %s1871_s23 = smov [#allocation8]  }
   0xf   :  { %s53_s22 = sshll.u32 %s1870_s1, 4  ;;  %s76_s24 = sshll.u32 %s1871_s23, 4  ;;  %s54_s22 = int_to_ptr.vmem [resolvable:$true] %s53_s22  ;;  %s1995_s24 = int_to_ptr.vmem [resolvable:$true] %s76_s24 }
  0x10   :  { %s2309_s3 = sld [smem:[#allocation34_spill]] }
  0x16   :  { %s1546_s26 = scalar_lea.hbm %s2309_s3, 64 }
  0x17   :  { %p1547_p0 = scmp.ne.s32.totalorder %s2309_s3, %s1546_s26  ;;  %p1550_p1 = scmp.lt.u32.totalorder %s1546_s26, %s2309_s3 }
  0x19   :  { %p1552_p2 = pnand %p1550_p1, %p1547_p0 }
  0x1b   :  { %1555 = shalt.err (!%p1552_p2)
}
  0x1c   :  { %s1556_s30 = scalar_lea.vmem %s54_s22, 64  ;;  %p1561_p4 = scmp.lt.s32.totalorder %s54_s22, %s54_s22 }
  0x1d   :  { %p1557_p3 = scmp.ne.s32.totalorder %s54_s22, %s1556_s30  ;;  %p1562_p5 = scmp.lt.s32.totalorder %s1556_s30, %s1556_s30 }
  0x1f   :  { %p1563_p6 = por %p1562_p5, %p1561_p4 }
  0x21   :  { %p1564_p7 = pnand %p1563_p6, %p1557_p3 }
  0x23   :  { %1567 = shalt.err (!%p1564_p7)
}
  0x24   :  { %56 = dma.hbm_to_vmem [thread:$0]  %s2309_s3, 64, %s54_s22, [#allocation6]  }
  0x25   :  { %s1568_s2 = scalar_lea.hbm %s2283_s6, 512 }
  0x26   :  { %p1569_p8 = scmp.ne.s32.totalorder %s2283_s6, %s1568_s2  ;;  %p1572_p9 = scmp.lt.u32.totalorder %s1568_s2, %s2283_s6 }
  0x28   :  { %p1574_p10 = pnand %p1572_p9, %p1569_p8 }
  0x2a   :  { %1577 = shalt.err (!%p1574_p10)
}
  0x2b   :  { %s1578_s4 = scalar_lea.vmem %s1995_s24, 512  ;;  %p1583_p12 = scmp.lt.s32.totalorder %s1995_s24, %s1995_s24 }
  0x2c   :  { %p1579_p11 = scmp.ne.s32.totalorder %s1995_s24, %s1578_s4  ;;  %p1584_p13 = scmp.lt.s32.totalorder %s1578_s4, %s1578_s4 }
  0x2e   :  { %p1585_p0 = por %p1584_p13, %p1583_p12 }
  0x30   :  { %p1586_p1 = pnand %p1585_p0, %p1579_p11 }
  0x32   :  { %1589 = shalt.err (!%p1586_p1)
}
  0x33   :  { %s1872_s22 = smov 128   ;;  %s1873_s3 = smov 8  }
  0x34   :  { %82 = dma.hbm_to_vmem [thread:$0]  %s2283_s6, 512, %s1995_s24, [#allocation9], %s1872_s22, %s1872_s22, %s1873_s3  }
  0x35   :  { %s1874_s0 = smov [#allocation11]   ;;  %s1875_s1 = smov [#allocation14]  }
  0x36   :  { %s98_s21 = sshll.u32 %s1874_s0, 4  ;;  %s123_s23 = sshll.u32 %s1875_s1, 4  ;;  %s99_s21 = int_to_ptr.vmem [resolvable:$true] %s98_s21  ;;  %s124_s23 = int_to_ptr.vmem [resolvable:$true] %s123_s23 }
  0x37   :  { %s1590_s27 = scalar_lea.hbm %s2285_s8, 512 }
  0x38   :  { %p1591_p2 = scmp.ne.s32.totalorder %s2285_s8, %s1590_s27  ;;  %p1594_p3 = scmp.lt.u32.totalorder %s1590_s27, %s2285_s8 }
  0x3a   :  { %p1596_p4 = pnand %p1594_p3, %p1591_p2 }
  0x3c   :  { %1599 = shalt.err (!%p1596_p4)
}
  0x3d   :  { %s1600_s6 = scalar_lea.vmem %s99_s21, 512  ;;  %p1605_p6 = scmp.lt.s32.totalorder %s99_s21, %s99_s21 }
  0x3e   :  { %p1601_p5 = scmp.ne.s32.totalorder %s99_s21, %s1600_s6  ;;  %p1606_p7 = scmp.lt.s32.totalorder %s1600_s6, %s1600_s6 }
  0x40   :  { %p1607_p8 = por %p1606_p7, %p1605_p6 }
  0x42   :  { %p1608_p9 = pnand %p1607_p8, %p1601_p5 }
  0x44   :  { %1611 = shalt.err (!%p1608_p9)
}
  0x45   :  { %104 = dma.hbm_to_vmem [thread:$0]  %s2285_s8, 512, %s99_s21, [#allocation12], %s1872_s22, %s1872_s22, %s1873_s3  }
  0x46   :  { %s1612_s20 = scalar_lea.hbm %s2288_s11, 16 }
  0x47   :  { %p1613_p10 = scmp.ne.s32.totalorder %s2288_s11, %s1612_s20  ;;  %p1616_p11 = scmp.lt.u32.totalorder %s1612_s20, %s2288_s11 }
  0x49   :  { %p1618_p12 = pnand %p1616_p11, %p1613_p10 }
  0x4b   :  { %1621 = shalt.err (!%p1618_p12)
}
  0x4c   :  { %s1622_s26 = scalar_lea.vmem %s124_s23, 16  ;;  %s1626_s28 = scalar_lea.vmem %s124_s23, 32 }
  0x4d   :  { %p1623_p13 = scmp.ne.s32.totalorder %s124_s23, %s1622_s26  ;;  %p1627_p0 = scmp.lt.s32.totalorder %s124_s23, %s124_s23 }
  0x4e   :  { %p1628_p1 = scmp.lt.s32.totalorder %s1626_s28, %s1622_s26 }
  0x50   :  { %p1629_p2 = por %p1628_p1, %p1627_p0 }
  0x52   :  { %p1630_p3 = pnand %p1629_p2, %p1623_p13 }
  0x54   :  { %1633 = shalt.err (!%p1630_p3)
}
  0x55   :  { %126 = dma.hbm_to_vmem [thread:$0]  %s2288_s11, 16, %s124_s23, [#allocation15]  }
  0x56   :  { %s1876_s4 = smov [#allocation17]   ;;  %s1877_s24 = smov [#allocation20]  }
  0x57   :  { %s145_s6 = sshll.u32 %s1876_s4, 4  ;;  %s168_s29 = sshll.u32 %s1877_s24, 4  ;;  %s146_s6 = int_to_ptr.vmem [resolvable:$true] %s145_s6  ;;  %s2056_s29 = int_to_ptr.vmem [resolvable:$true] %s168_s29 }
  0x58   :  { %s1634_s20 = scalar_lea.hbm %s2290_s13, 16 }
  0x59   :  { %p1635_p4 = scmp.ne.s32.totalorder %s2290_s13, %s1634_s20  ;;  %p1638_p5 = scmp.lt.u32.totalorder %s1634_s20, %s2290_s13 }
  0x5b   :  { %p1640_p6 = pnand %p1638_p5, %p1635_p4 }
  0x5d   :  { %1643 = shalt.err (!%p1640_p6)
}
  0x5e   :  { %s1644_s11 = scalar_lea.vmem %s146_s6, 16  ;;  %s1648_s23 = scalar_lea.vmem %s146_s6, 32 }
  0x5f   :  { %p1645_p7 = scmp.ne.s32.totalorder %s146_s6, %s1644_s11  ;;  %p1649_p8 = scmp.lt.s32.totalorder %s146_s6, %s146_s6 }
  0x60   :  { %p1650_p9 = scmp.lt.s32.totalorder %s1648_s23, %s1644_s11 }
  0x62   :  { %p1651_p10 = por %p1650_p9, %p1649_p8 }
  0x64   :  { %p1652_p11 = pnand %p1651_p10, %p1645_p7 }
  0x66   :  { %1655 = shalt.err (!%p1652_p11)
}
  0x67   :  { %148 = dma.hbm_to_vmem [thread:$0]  %s2290_s13, 16, %s146_s6, [#allocation18]  }
  0x68   :  { %s1656_s4 = scalar_lea.hbm %s2293_s16, 512 }
  0x69   :  { %p1657_p12 = scmp.ne.s32.totalorder %s2293_s16, %s1656_s4  ;;  %p1660_p13 = scmp.lt.u32.totalorder %s1656_s4, %s2293_s16 }
  0x6b   :  { %p1662_p0 = pnand %p1660_p13, %p1657_p12 }
  0x6d   :  { %1665 = shalt.err (!%p1662_p0)
}
  0x6e   :  { %s1666_s1 = scalar_lea.vmem %s2056_s29, 512  ;;  %p1671_p2 = scmp.lt.s32.totalorder %s2056_s29, %s2056_s29 }
  0x6f   :  { %p1667_p1 = scmp.ne.s32.totalorder %s2056_s29, %s1666_s1  ;;  %p1672_p3 = scmp.lt.s32.totalorder %s1666_s1, %s1666_s1 }
  0x71   :  { %p1673_p4 = por %p1672_p3, %p1671_p2 }
  0x73   :  { %p1674_p5 = pnand %p1673_p4, %p1667_p1 }
  0x75   :  { %1677 = shalt.err (!%p1674_p5)
}
  0x76   :  { %174 = dma.hbm_to_vmem [thread:$0]  %s2293_s16, 512, %s2056_s29, [#allocation21], %s1872_s22, %s1872_s22, %s1873_s3  }
  0x77   :  { %s1878_s2 = smov [#allocation2]   ;;  %s2310_s23 = sld [smem:[#allocation33_spill]] }
  0x78   :  { %s40_s25 = sshll.u32 %s1878_s2, 4  ;;  %s41_s25 = int_to_ptr.vmem [resolvable:$true] %s40_s25 }
  0x7d   :  { %s1678_s26 = scalar_lea.hbm %s2310_s23, 128 }
  0x7e   :  { %p1679_p6 = scmp.ne.s32.totalorder %s2310_s23, %s1678_s26  ;;  %p1682_p7 = scmp.lt.u32.totalorder %s1678_s26, %s2310_s23 }
  0x80   :  { %p1684_p8 = pnand %p1682_p7, %p1679_p6 }
  0x82   :  { %1687 = shalt.err (!%p1684_p8)
}
  0x83   :  { %s1688_s24 = scalar_lea.vmem %s41_s25, 128  ;;  %p1693_p10 = scmp.lt.s32.totalorder %s41_s25, %s41_s25 }
  0x84   :  { %p1689_p9 = scmp.ne.s32.totalorder %s41_s25, %s1688_s24  ;;  %p1694_p11 = scmp.lt.s32.totalorder %s1688_s24, %s1688_s24 }
  0x86   :  { %p1695_p12 = por %p1694_p11, %p1693_p10 }
  0x88   :  { %p1696_p13 = pnand %p1695_p12, %p1689_p9 }
  0x8a   :  { %1699 = shalt.err (!%p1696_p13)
}
  0x8b   :  { %s1879_s16 = smov 64   ;;  %s1880_s29 = smov 4  }
  0x8c   :  { %46 = dma.hbm_to_vmem [thread:$0]  %s2310_s23, 128, %s41_s25, [#allocation3], %s1879_s16, %s1879_s16, %s1880_s29  }
  0x8d   :  { %s1881_s20 = smov [#allocation7]   ;;  %s1882_s13 = smov [#allocation10]  }
  0x8e   :  { %s67_s1 = sshll.u32 %s1881_s20, 4  ;;  %s89_s6 = sshll.u32 %s1882_s13, 4  ;;  %s68_s1 = int_to_ptr.vmem [resolvable:$true] %s67_s1  ;;  %s90_s6 = int_to_ptr.vmem [resolvable:$true] %s89_s6 }
  0x8f   :  { %s1700_s11 = scalar_lea.hbm %s2282_s5, 16 }
  0x90   :  { %p1701_p0 = scmp.ne.s32.totalorder %s2282_s5, %s1700_s11  ;;  %p1704_p1 = scmp.lt.u32.totalorder %s1700_s11, %s2282_s5 }
  0x92   :  { %p1706_p2 = pnand %p1704_p1, %p1701_p0 }
  0x94   :  { %1709 = shalt.err (!%p1706_p2)
}
  0x95   :  { %s1710_s25 = scalar_lea.vmem %s68_s1, 16  ;;  %s1714_s23 = scalar_lea.vmem %s68_s1, 32 }
  0x96   :  { %p1711_p3 = scmp.ne.s32.totalorder %s68_s1, %s1710_s25  ;;  %p1715_p4 = scmp.lt.s32.totalorder %s68_s1, %s68_s1 }
  0x97   :  { %p1716_p5 = scmp.lt.s32.totalorder %s1714_s23, %s1710_s25 }
  0x99   :  { %p1717_p6 = por %p1716_p5, %p1715_p4 }
  0x9b   :  { %p1718_p7 = pnand %p1717_p6, %p1711_p3 }
  0x9d   :  { %1721 = shalt.err (!%p1718_p7)
}
  0x9e   :  { %70 = dma.hbm_to_vmem [thread:$0]  %s2282_s5, 16, %s68_s1, [#allocation6]  }
  0x9f   :  { %s1722_s30 = scalar_lea.hbm %s2284_s7, 16 }
  0xa0   :  { %p1723_p8 = scmp.ne.s32.totalorder %s2284_s7, %s1722_s30  ;;  %p1726_p9 = scmp.lt.u32.totalorder %s1722_s30, %s2284_s7 }
  0xa2   :  { %p1728_p10 = pnand %p1726_p9, %p1723_p8 }
  0xa4   :  { %1731 = shalt.err (!%p1728_p10)
}
  0xa5   :  { %s1732_s27 = scalar_lea.vmem %s90_s6, 16  ;;  %s1736_s11 = scalar_lea.vmem %s90_s6, 32 }
  0xa6   :  { %p1733_p11 = scmp.ne.s32.totalorder %s90_s6, %s1732_s27  ;;  %p1737_p12 = scmp.lt.s32.totalorder %s90_s6, %s90_s6 }
  0xa7   :  { %p1738_p13 = scmp.lt.s32.totalorder %s1736_s11, %s1732_s27 }
  0xa9   :  { %p1739_p0 = por %p1738_p13, %p1737_p12 }
  0xab   :  { %p1740_p1 = pnand %p1739_p0, %p1733_p11 }
  0xad   :  { %1743 = shalt.err (!%p1740_p1)
}
  0xae   :  { %92 = dma.hbm_to_vmem [thread:$0]  %s2284_s7, 16, %s90_s6, [#allocation9]  }
  0xaf   :  { %s1883_s26 = smov [#allocation13]   ;;  %s1884_s8 = smov [#allocation16]  }
  0xb0   :  { %s111_s28 = sshll.u32 %s1883_s26, 4  ;;  %s132_s21 = sshll.u32 %s1884_s8, 4  ;;  %s112_s28 = int_to_ptr.vmem [resolvable:$true] %s111_s28  ;;  %s133_s21 = int_to_ptr.vmem [resolvable:$true] %s132_s21 }
  0xb1   :  { %s1744_s4 = scalar_lea.hbm %s2286_s9, 16 }
  0xb2   :  { %p1745_p2 = scmp.ne.s32.totalorder %s2286_s9, %s1744_s4  ;;  %p1748_p3 = scmp.lt.u32.totalorder %s1744_s4, %s2286_s9 }
  0xb4   :  { %p1750_p4 = pnand %p1748_p3, %p1745_p2 }
  0xb6   :  { %1753 = shalt.err (!%p1750_p4)
}
  0xb7   :  { %s1754_s7 = scalar_lea.vmem %s112_s28, 16  ;;  %s1758_s6 = scalar_lea.vmem %s112_s28, 32 }
  0xb8   :  { %p1755_p5 = scmp.ne.s32.totalorder %s112_s28, %s1754_s7  ;;  %p1759_p6 = scmp.lt.s32.totalorder %s112_s28, %s112_s28 }
  0xb9   :  { %p1760_p7 = scmp.lt.s32.totalorder %s1758_s6, %s1754_s7 }
  0xbb   :  { %p1761_p8 = por %p1760_p7, %p1759_p6 }
  0xbd   :  { %p1762_p9 = pnand %p1761_p8, %p1755_p5 }
  0xbf   :  { %1765 = shalt.err (!%p1762_p9)
}
  0xc0   :  { %114 = dma.hbm_to_vmem [thread:$0]  %s2286_s9, 16, %s112_s28, [#allocation12]  }
  0xc1   :  { %s1766_s27 = scalar_lea.hbm %s2289_s12, 512 }
  0xc2   :  { %p1767_p10 = scmp.ne.s32.totalorder %s2289_s12, %s1766_s27  ;;  %p1770_p11 = scmp.lt.u32.totalorder %s1766_s27, %s2289_s12 }
  0xc4   :  { %p1772_p12 = pnand %p1770_p11, %p1767_p10 }
  0xc6   :  { %1775 = shalt.err (!%p1772_p12)
}
  0xc7   :  { %s1776_s8 = scalar_lea.vmem %s133_s21, 512  ;;  %p1781_p0 = scmp.lt.s32.totalorder %s133_s21, %s133_s21 }
  0xc8   :  { %p1777_p13 = scmp.ne.s32.totalorder %s133_s21, %s1776_s8  ;;  %p1782_p1 = scmp.lt.s32.totalorder %s1776_s8, %s1776_s8 }
  0xca   :  { %p1783_p2 = por %p1782_p1, %p1781_p0 }
  0xcc   :  { %p1784_p3 = pnand %p1783_p2, %p1777_p13 }
  0xce   :  { %1787 = shalt.err (!%p1784_p3)
}
  0xcf   :  { %138 = dma.hbm_to_vmem [thread:$0]  %s2289_s12, 512, %s133_s21, [#allocation15], %s1872_s22, %s1872_s22, %s1873_s3  }
  0xd0   :  { %s1885_s25 = smov [#allocation19]   ;;  %s1886_s4 = smov [#allocation22]  }
  0xd1   :  { %s154_s23 = sshll.u32 %s1885_s25, 4  ;;  %s182_s24 = sshll.u32 %s1886_s4, 4  ;;  %s155_s23 = int_to_ptr.vmem [resolvable:$true] %s154_s23  ;;  %s183_s24 = int_to_ptr.vmem [resolvable:$true] %s182_s24 }
  0xd2   :  { %s1788_s30 = scalar_lea.hbm %s2291_s14, 512 }
  0xd3   :  { %p1789_p4 = scmp.ne.s32.totalorder %s2291_s14, %s1788_s30  ;;  %p1792_p5 = scmp.lt.u32.totalorder %s1788_s30, %s2291_s14 }
  0xd5   :  { %p1794_p6 = pnand %p1792_p5, %p1789_p4 }
  0xd7   :  { %1797 = shalt.err (!%p1794_p6)
}
  0xd8   :  { %s1798_s12 = scalar_lea.vmem %s155_s23, 512  ;;  %p1803_p8 = scmp.lt.s32.totalorder %s155_s23, %s155_s23 }
  0xd9   :  { %p1799_p7 = scmp.ne.s32.totalorder %s155_s23, %s1798_s12  ;;  %p1804_p9 = scmp.lt.s32.totalorder %s1798_s12, %s1798_s12 }
  0xdb   :  { %p1805_p10 = por %p1804_p9, %p1803_p8 }
  0xdd   :  { %p1806_p11 = pnand %p1805_p10, %p1799_p7 }
  0xdf   :  { %1809 = shalt.err (!%p1806_p11)
}
  0xe0   :  { %160 = dma.hbm_to_vmem [thread:$0]  %s2291_s14, 512, %s155_s23, [#allocation18], %s1872_s22, %s1872_s22, %s1873_s3  }
  0xe1   :  { %s1810_s11 = scalar_lea.hbm %s2295_s18, 512 }
  0xe2   :  { %p1811_p12 = scmp.ne.s32.totalorder %s2295_s18, %s1810_s11  ;;  %p1814_p13 = scmp.lt.u32.totalorder %s1810_s11, %s2295_s18 }
  0xe4   :  { %p1816_p0 = pnand %p1814_p13, %p1811_p12 }
  0xe6   :  { %1819 = shalt.err (!%p1816_p0)
}
  0xe7   :  { %s1820_s9 = scalar_lea.vmem %s183_s24, 512  ;;  %p1825_p2 = scmp.lt.s32.totalorder %s183_s24, %s183_s24 }
  0xe8   :  { %p1821_p1 = scmp.ne.s32.totalorder %s183_s24, %s1820_s9  ;;  %p1826_p3 = scmp.lt.s32.totalorder %s1820_s9, %s1820_s9 }
  0xea   :  { %p1827_p4 = por %p1826_p3, %p1825_p2 }
  0xec   :  { %p1828_p5 = pnand %p1827_p4, %p1821_p1 }
  0xee   :  { %1831 = shalt.err (!%p1828_p5)
}
  0xef   :  { %188 = dma.hbm_to_vmem [thread:$0]  %s2295_s18, 512, %s183_s24, [#allocation21], %s1872_s22, %s1872_s22, %s1873_s3  }
  0xf0   :  { %1854 = dma.done.wait [#allocation3], 128  }
  0xf1   :  { %1855 = vsyncadd [#allocation3], 4294967168 }
  0xf2   :  { %1856 = dma.done.wait [#allocation6], 80  }
  0xf3   :  { %1857 = vsyncadd [#allocation6], 4294967216 }
  0xf4   :  { %1858 = dma.done.wait [#allocation9], 528  }
  0xf5   :  { %1859 = vsyncadd [#allocation9], 4294966768 }
  0xf6   :  { %1860 = dma.done.wait [#allocation12], 528  }
  0xf7   :  { %1861 = vsyncadd [#allocation12], 4294966768 }
  0xf8   :  { %1862 = dma.done.wait [#allocation15], 528  }
  0xf9   :  { %1863 = vsyncadd [#allocation15], 4294966768 }
  0xfa   :  { %1864 = dma.done.wait [#allocation18], 528  }
  0xfb   :  { %1865 = vsyncadd [#allocation18], 4294966768 }
  0xfc   :  { %1866 = dma.done.wait [#allocation21], 1024  }
  0xfd   :  { %1867 = vsyncadd [#allocation21], 4294966272  ;;  %v1887_v0 = vmov 0.0   ;;  %vm1888_vm0 = vmmov 0   ;;  %s2311_s23 = sld [smem:[#allocation32_spill]]  ;;  %vm257_vm1 = vcmask 1044480  }
  0xfe   :  { %1350 = vmatprep.subr.bf16.mxu0 %v1887_v0  ;;  %1352 = vmatprep.mubr.msk.bf16.mxu0 %vm1888_vm0, %v1887_v0  ;;  %v2193_v5 = vld [vmem:[#allocation2] sm:$0x1f]   ;;  %vm253_vm2 = vcmask 80896   ;;  %v235_v6 = vld [vmem:[#allocation5] sm:$0xf]  ;;  %vm317_vm3 = vcmask 1043456  }
  0xff   :  { %1356 = vmatprep.subr.msk.mxu1 %vm317_vm3, %v235_v6  ;;  %s2312_s30 = sld [smem:[#allocation36_spill]]  ;;  %vm310_vm4 = vcmask 31744   ;;  %v242_v19 = vld [vmem:[#allocation8] sm:$0xff]  ;;  %v243_v20 = vld [vmem:[#allocation8 + $0x8] sm:$0xff]  ;;  %s2313_s27 = sld [smem:[#allocation35_spill]]  ;;  %vm404_vm5 = vcmask 261120  }
 0x100   :  { %1357 = vmatpush3.msk.msra.mxu1 %vm317_vm3, %v235_v6  ;;  %v1469_v21 = vpack.c.bf16 %v243_v20, %v242_v19  ;;  %v244_v29 = vld [vmem:[#allocation8 + $0x10] sm:$0xff]  ;;  %v245_v30 = vld [vmem:[#allocation8 + $0x18] sm:$0xff]  ;;  %v1270_v39 = vld [vmem:[#allocation10] ss:$0 sm:$0xff]  ;;  %s1889_s24 = smov [#allocation23]   ;;  %vm1236_vm6 = vcmask 254976  }
 0x101   :  { %v1473_v31 = vpack.c.bf16 %v245_v30, %v244_v29  ;;  %v1267_v32 = vld [vmem:[#allocation7] ss:$0 sm:$0xff]  ;;  %v577_v45 = vld [vmem:[#allocation11] sm:$0xff]  ;;  %v578_v46 = vld [vmem:[#allocation11 + $0x8] sm:$0xff]  ;;  %s1243_s16 = sshll.u32 %s1889_s24, 4  ;;  %s1244_s16 = int_to_ptr.vmem [resolvable:$true] %s1243_s16 }
 0x102   :  { %v1477_v49 = vpack.c.bf16 %v578_v46, %v577_v45  ;;  %v579_v51 = vld [vmem:[#allocation11 + $0x10] sm:$0xff]  ;;  %v580_v52 = vld [vmem:[#allocation11 + $0x18] sm:$0xff]  ;;  %v584_v63 = vld [vmem:[%s2287_s10 + $0x10] sm:$0xff]  ;;  %p1837_p7 = scmp.lt.s32.totalorder %s1244_s16, %s1244_s16 }
 0x103   :  { %v233_v1 = vld [vmem:[%s2311_s23] sm:$0xff]  ;;  %v234_v2 = vld [vmem:[%s2311_s23 + $0x8] sm:$0x3]  ;;  %v1481_v53 = vpack.c.bf16 %v580_v52, %v579_v51  ;;  %v906_v29 = vld [vmem:[#allocation19] sm:$0xff] }
 0x104   :  { %v247_v3 = vpack.c.bf16 %v234_v2, %v233_v1  ;;  %v582_v54 = vld [vmem:[%s2287_s10] sm:$0xff]  ;;  %v583_v55 = vld [vmem:[%s2287_s10 + $0x8] sm:$0xff] }
 0x105   :  { %v237_v7 = vld [vmem:[%s2312_s30] sm:$0xff]  ;;  %v238_v8 = vld [vmem:[%s2312_s30 + $0x8] sm:$0xff]  ;;  %v239_v16 = vld [vmem:[%s2312_s30 + $0x10] sm:$0xff]  ;;  %v1485_v56 = vpack.c.bf16 %v583_v55, %v582_v54 }
 0x106   :  { %v259_v4 = vsel %vm257_vm1, %v247_v3, 0  ;;  %v1461_v9 = vpack.c.bf16 %v238_v8, %v237_v7  ;;  %v240_v17 = vld [vmem:[%s2312_s30 + $0x18] sm:$0xff]  ;;  %v1263_v22 = vld [vmem:[%s2313_s27] ss:$0 sm:$0xff]  ;;  %v1274_v7 = vld [vmem:[#allocation13] ss:$0 sm:$0xff] }
 0x107   :  { %1351 = vmatpush3.bf16.msra.mxu0 %v259_v4  ;;  %v1465_v18 = vpack.c.bf16 %v240_v17, %v239_v16  ;;  %v587_v3 = vld [vmem:[#allocation16] sm:$0xff]  ;;  %v588_v4 = vld [vmem:[#allocation16 + $0x8] sm:$0xff]  ;;  %v1277_v17 = vld [vmem:[#allocation14] ss:$0 sm:$0xff] }
 0x108   :  { %1462 = vmatprep.subr.bf16.mxu1 %v1461_v9  ;;  %1470 = vmatprep.subr.bf16.mxu0 %v1469_v21  ;;  %v1493_v6 = vpack.c.bf16 %v588_v4, %v587_v3  ;;  %v907_v30 = vld [vmem:[#allocation19 + $0x8] sm:$0xff] }
 0x109   :  { %v1284_v52 = vld [vmem:[%s2292_s15] ss:$0 sm:$0xff] }
 0x10a   :  { %1353 = vmatmul.mubr.msk.bf16.vlgmr.msra.gmra.mrb[0].mxu0 %vm253_vm2, %v2193_v5 }
 0x10b   :  { %1472 = vmatpush3.bf16.msra.mxu0 %v1469_v21 }
 0x10c   :  { %1474 = vmatprep.subr.bf16.mxu0 %v1473_v31 }
 0x10f   :  { %1476 = vmatpush3.bf16.msra.mxu0 %v1473_v31 }
 0x110   :  { %1383 = vmatprep.subr.bf16.mxu0 %v1887_v0 }
 0x1dd   :  { %v295_v10 = vpop.f32.mrb[0].mxu0 }
 0x1de   :  { %v302_v11 = vadd.f32 %v295_v10, %v233_v1  ;;  %v1354_v12 = vpop.f32.mrb[1].mxu0  ;;  %v585_v1 = vld [vmem:[%s2287_s10 + $0x18] sm:$0xff] }
 0x1df   :  { %v298_v13 = vpop.f32.mrb[2].mxu0 }
 0x1e0   :  { %v303_v14 = vadd.f32 %v298_v13, %v234_v2  ;;  %v1355_v15 = vpop.f32.mrb[3].mxu0  ;;  %1358 = vmatprep.mubr.msk.f32.mxu1 %vm310_vm4, %v302_v11  ;;  %v1489_v2 = vpack.c.bf16 %v585_v1, %v584_v63 }
 0x1e1   :  { %v590_v15 = vld [vmem:[#allocation16 + $0x18] sm:$0xff] }
 0x1e2   :  { %1359 = vmatmul.mubr.msk.f32.vlgmr.msra.gmra.mrb[0].mxu1 %vm310_vm4, %v303_v14  ;;  %v589_v14 = vld [vmem:[#allocation16 + $0x10] sm:$0xff] }
 0x1e3   :  { %1464 = vmatpush3.bf16.msra.mxu1 %v1461_v9  ;;  %v1497_v16 = vpack.c.bf16 %v590_v15, %v589_v14 }
 0x1e4   :  { %1466 = vmatprep.subr.bf16.mxu1 %v1465_v18 }
 0x1e7   :  { %1468 = vmatpush3.bf16.msra.mxu1 %v1465_v18 }
 0x1e8   :  { %1486 = vmatprep.subr.bf16.mxu1 %v1485_v56 }
 0x2b5   :  { %v1360_v23 = vpop.f32.mrb[0].mxu1 }
 0x2b6   :  { %v393_v24 = vadd.f32 %v1360_v23, %v1263_v22  ;;  %v387_v25 = vpop.f32.mrb[1].mxu1 }
 0x2b7   :  { %v388_v26 = vadd.f32 %v1263_v22, %v387_v25 }
 0x2b8   :  { %v397_v28 = vmax.f32 %v393_v24, 0.0  ;;  %v1280_v24 = vld [vmem:[#allocation17] ss:$0 sm:$0xff] }
 0x2b9   :  { %v396_v27 = vmax.f32 %v388_v26, 0.0 }
 0x2bb   :  { %1369 = vmatprep.mubr.msk.f32.mxu1 %vm404_vm5, %v396_v27 }
 0x2bc   :  { %1370 = vmatmul.mubr.msk.f32.vlgmr.msra.gmra.mrb[2].mxu1 %vm404_vm5, %v397_v28 }
 0x2bd   :  { %1488 = vmatpush3.bf16.msra.mxu1 %v1485_v56 }
 0x2be   :  { %1490 = vmatprep.subr.bf16.mxu1 %v1489_v2 }
 0x2c1   :  { %1492 = vmatpush3.bf16.msra.mxu1 %v1489_v2 }
 0x2c2   :  { %1422 = vmatprep.subr.bf16.mxu1 %v1887_v0 }
 0x38f   :  { %v1371_v33 = vpop.f32.mrb[2].mxu1 }
 0x390   :  { %v483_v34 = vadd.f32 %v1371_v33, %v1267_v32  ;;  %v477_v35 = vpop.f32.mrb[3].mxu1  ;;  %v1501_v33 = vpack.c.bf16 %v907_v30, %v906_v29 }
 0x391   :  { %v478_v36 = vadd.f32 %v1267_v32, %v477_v35  ;;  %v908_v35 = vld [vmem:[#allocation19 + $0x10] sm:$0xff] }
 0x392   :  { %v487_v38 = vmax.f32 %v483_v34, 0.0 }
 0x393   :  { %v486_v37 = vmax.f32 %v478_v36, 0.0  ;;  %v909_v36 = vld [vmem:[#allocation19 + $0x18] sm:$0xff] }
 0x395   :  { %1380 = vmatprep.mubr.msk.f32.mxu0 %vm404_vm5, %v486_v37  ;;  %v1505_v37 = vpack.c.bf16 %v909_v36, %v908_v35 }
 0x396   :  { %1381 = vmatmul.mubr.msk.f32.vlgmr.msra.gmra.mrb[4].mxu0 %vm404_vm5, %v487_v38  ;;  %v911_v38 = vld [vmem:[#allocation20] sm:$0xff] }
 0x397   :  { %1385 = vmatprep.mubr.msk.bf16.mxu0 %vm1888_vm0, %v1887_v0 }
 0x469   :  { %v1382_v40 = vpop.f32.mrb[4].mxu0 }
 0x46a   :  { %v572_v41 = vadd.f32 %v1382_v40, %v1270_v39  ;;  %v566_v42 = vpop.f32.mrb[5].mxu0 }
 0x46b   :  { %v567_v43 = vadd.f32 %v1270_v39, %v566_v42  ;;  %v912_v39 = vld [vmem:[#allocation20 + $0x8] sm:$0xff] }
 0x46c   :  { %v576_v44 = vmax.f32 %v572_v41, 0.0  ;;  %v1509_v40 = vpack.c.bf16 %v912_v39, %v911_v38 }
 0x46d   :  { %v575_v47 = vmax.f32 %v567_v43, 0.0 }
 0x46f   :  { %v592_v48 = vpack.c.bf16 %v576_v44, %v575_v47 }
 0x471   :  { %v594_v50 = vsel %vm257_vm1, %v592_v48, 0 }
 0x472   :  { %1384 = vmatpush3.bf16.msra.mxu0 %v594_v50  ;;  %v917_v50 = vld [vmem:[#allocation22 + $0x8] sm:$0xff] }
 0x473   :  { %1478 = vmatprep.subr.bf16.mxu0 %v1477_v49 }
 0x475   :  { %1386 = vmatmul.mubr.msk.bf16.vlgmr.msra.gmra.mrb[8].mxu0 %vm253_vm2, %v2193_v5 }
 0x476   :  { %1480 = vmatpush3.bf16.msra.mxu0 %v1477_v49  ;;  %v916_v49 = vld [vmem:[#allocation22] sm:$0xff] }
 0x477   :  { %1482 = vmatprep.subr.bf16.mxu0 %v1481_v53  ;;  %v1517_v51 = vpack.c.bf16 %v917_v50, %v916_v49 }
 0x47a   :  { %1484 = vmatpush3.bf16.msra.mxu0 %v1481_v53 }
 0x47b   :  { %1494 = vmatprep.subr.bf16.mxu0 %v1493_v6 }
 0x548   :  { %v630_v57 = vpop.f32.mrb[8].mxu0 }
 0x549   :  { %v637_v58 = vadd.f32 %v630_v57, %v575_v47  ;;  %v1387_v59 = vpop.f32.mrb[9].mxu0  ;;  %v914_v47 = vld [vmem:[#allocation20 + $0x18] sm:$0xff] }
 0x54a   :  { %v633_v60 = vpop.f32.mrb[10].mxu0  ;;  %v918_v59 = vld [vmem:[#allocation22 + $0x10] sm:$0xff] }
 0x54b   :  { %v638_v61 = vadd.f32 %v633_v60, %v576_v44  ;;  %v1388_v62 = vpop.f32.mrb[11].mxu0  ;;  %1397 = vmatprep.mubr.msk.f32.mxu0 %vm404_vm5, %v637_v58  ;;  %v919_v60 = vld [vmem:[#allocation22 + $0x18] sm:$0xff] }
 0x54c   :  { %v1287_v62 = vld [vmem:[%s2294_s17] ss:$0 sm:$0xff]  ;;  %s1832_s17 = scalar_lea.vmem %s1244_s16, 256 }
 0x54d   :  { %1398 = vmatmul.mubr.msk.f32.vlgmr.msra.gmra.mrb[6].mxu0 %vm404_vm5, %v638_v61  ;;  %v1521_v61 = vpack.c.bf16 %v919_v60, %v918_v59  ;;  %p1833_p6 = scmp.ne.s32.totalorder %s1244_s16, %s1832_s17  ;;  %p1838_p8 = scmp.lt.s32.totalorder %s1832_s17, %s1832_s17 }
 0x54e   :  { %1496 = vmatpush3.bf16.msra.mxu0 %v1493_v6 }
 0x54f   :  { %1498 = vmatprep.subr.bf16.mxu0 %v1497_v16  ;;  %p1839_p9 = por %p1838_p8, %p1837_p7 }
 0x551   :  { %p1840_p10 = pnand %p1839_p9, %p1833_p6 }
 0x552   :  { %1500 = vmatpush3.bf16.msra.mxu0 %v1497_v16 }
 0x553   :  { %1510 = vmatprep.subr.bf16.mxu0 %v1509_v40 }
 0x620   :  { %v1399_v8 = vpop.f32.mrb[6].mxu0 }
 0x621   :  { %v723_v9 = vadd.f32 %v1399_v8, %v1274_v7  ;;  %v717_v10 = vpop.f32.mrb[7].mxu0 }
 0x622   :  { %v718_v11 = vadd.f32 %v1274_v7, %v717_v10  ;;  %v1290_v7 = vld [vmem:[%s2296_s19] ss:$0 sm:$0xff] }
 0x623   :  { %v727_v13 = vmax.f32 %v723_v9, 0.0 }
 0x624   :  { %v726_v12 = vmax.f32 %v718_v11, 0.0 }
 0x626   :  { %1408 = vmatprep.mubr.msk.f32.mxu1 %vm404_vm5, %v726_v12 }
 0x627   :  { %1409 = vmatmul.mubr.msk.f32.vlgmr.msra.gmra.mrb[4].mxu1 %vm404_vm5, %v727_v13 }
 0x628   :  { %1424 = vmatprep.mubr.msk.bf16.mxu1 %vm1888_vm0, %v1887_v0 }
 0x6fa   :  { %v1410_v18 = vpop.f32.mrb[4].mxu1 }
 0x6fb   :  { %v812_v19 = vadd.f32 %v1410_v18, %v1277_v17  ;;  %v806_v20 = vpop.f32.mrb[5].mxu1 }
 0x6fc   :  { %v807_v21 = vadd.f32 %v1277_v17, %v806_v20 }
 0x6fd   :  { %v816_v23 = vmax.f32 %v812_v19, 0.0 }
 0x6fe   :  { %v815_v22 = vmax.f32 %v807_v21, 0.0 }
 0x700   :  { %1419 = vmatprep.mubr.msk.f32.mxu0 %vm404_vm5, %v815_v22 }
 0x701   :  { %1420 = vmatmul.mubr.msk.f32.vlgmr.msra.gmra.mrb[12].mxu0 %vm404_vm5, %v816_v23 }
 0x702   :  { %1512 = vmatpush3.bf16.msra.mxu0 %v1509_v40 }
 0x7d4   :  { %v1421_v25 = vpop.f32.mrb[12].mxu0 }
 0x7d5   :  { %v901_v26 = vadd.f32 %v1421_v25, %v1280_v24  ;;  %v895_v0 = vpop.f32.mrb[13].mxu0 }
 0x7d6   :  { %v896_v27 = vadd.f32 %v1280_v24, %v895_v0 }
 0x7d7   :  { %v905_v28 = vmax.f32 %v901_v26, 0.0 }
 0x7d8   :  { %v904_v31 = vmax.f32 %v896_v27, 0.0 }
 0x7da   :  { %v921_v32 = vpack.c.bf16 %v905_v28, %v904_v31 }
 0x7dc   :  { %v923_v34 = vsel %vm257_vm1, %v921_v32, 0 }
 0x7dd   :  { %1423 = vmatpush3.bf16.msra.mxu1 %v923_v34 }
 0x7de   :  { %1502 = vmatprep.subr.bf16.mxu1 %v1501_v33 }
 0x7e0   :  { %1425 = vmatmul.mubr.msk.bf16.vlgmr.msra.gmra.mrb[8].mxu1 %vm253_vm2, %v2193_v5  ;;  %v913_v5 = vld [vmem:[#allocation20 + $0x10] sm:$0xff] }
 0x7e1   :  { %1504 = vmatpush3.bf16.msra.mxu1 %v1501_v33  ;;  %v1513_v48 = vpack.c.bf16 %v914_v47, %v913_v5 }
 0x7e2   :  { %1506 = vmatprep.subr.bf16.mxu1 %v1505_v37 }
 0x7e3   :  { %1514 = vmatprep.subr.bf16.mxu0 %v1513_v48 }
 0x7e4   :  { %1516 = vmatpush3.bf16.msra.mxu0 %v1513_v48 }
 0x7e5   :  { %1508 = vmatpush3.bf16.msra.mxu1 %v1505_v37 }
 0x7e6   :  { %1518 = vmatprep.subr.bf16.mxu1 %v1517_v51 }
 0x8b3   :  { %v959_v41 = vpop.f32.mrb[8].mxu1 }
 0x8b4   :  { %v966_v42 = vadd.f32 %v959_v41, %v904_v31  ;;  %v1426_v43 = vpop.f32.mrb[9].mxu1 }
 0x8b5   :  { %v962_v44 = vpop.f32.mrb[10].mxu1 }
 0x8b6   :  { %v967_v45 = vadd.f32 %v962_v44, %v905_v28  ;;  %v1427_v46 = vpop.f32.mrb[11].mxu1  ;;  %1436 = vmatprep.mubr.msk.f32.mxu1 %vm404_vm5, %v966_v42 }
 0x8b8   :  { %1437 = vmatmul.mubr.msk.f32.vlgmr.msra.gmra.mrb[6].mxu1 %vm404_vm5, %v967_v45 }
 0x8b9   :  { %1520 = vmatpush3.bf16.msra.mxu1 %v1517_v51 }
 0x8ba   :  { %1522 = vmatprep.subr.bf16.mxu1 %v1521_v61 }
 0x8bd   :  { %1524 = vmatpush3.bf16.msra.mxu1 %v1521_v61 }
 0x98b   :  { %v1438_v53 = vpop.f32.mrb[6].mxu1 }
 0x98c   :  { %v1052_v54 = vadd.f32 %v1438_v53, %v1284_v52  ;;  %v1046_v55 = vpop.f32.mrb[7].mxu1 }
 0x98d   :  { %v1047_v56 = vadd.f32 %v1284_v52, %v1046_v55 }
 0x98e   :  { %v1056_v58 = vmax.f32 %v1052_v54, 0.0 }
 0x98f   :  { %v1055_v57 = vmax.f32 %v1047_v56, 0.0 }
 0x991   :  { %1447 = vmatprep.mubr.msk.f32.mxu0 %vm404_vm5, %v1055_v57 }
 0x992   :  { %1448 = vmatmul.mubr.msk.f32.vlgmr.msra.gmra.mrb[14].mxu0 %vm404_vm5, %v1056_v58 }
 0xa65   :  { %v1449_v63 = vpop.f32.mrb[14].mxu0 }
 0xa66   :  { %v1141_v1 = vadd.f32 %v1449_v63, %v1287_v62  ;;  %v1135_v2 = vpop.f32.mrb[15].mxu0 }
 0xa67   :  { %v1136_v3 = vadd.f32 %v1287_v62, %v1135_v2 }
 0xa68   :  { %v1145_v6 = vmax.f32 %v1141_v1, 0.0 }
 0xa69   :  { %v1144_v4 = vmax.f32 %v1136_v3, 0.0 }
 0xa6b   :  { %1458 = vmatprep.mubr.msk.f32.mxu1 %vm404_vm5, %v1144_v4 }
 0xa6c   :  { %1459 = vmatmul.mubr.msk.f32.vlgmr.msra.gmra.mrb[12].mxu1 %vm404_vm5, %v1145_v6 }
 0xb3f   :  { %v1460_v8 = vpop.f32.mrb[12].mxu1 }
 0xb40   :  { %v1230_v9 = vadd.f32 %v1460_v8, %v1290_v7  ;;  %v1224_v10 = vpop.f32.mrb[13].mxu1 }
 0xb41   :  { %v1225_v11 = vadd.f32 %v1290_v7, %v1224_v10 }
 0xb42   :  { %v1234_v12 = vmax.f32 %v1230_v9, 0.0 }
 0xb43   :  { %v1233_v13 = vmax.f32 %v1225_v11, 0.0 }
 0xb44   :  { %1237 = vst.msk [vmem:[#allocation23 + $0x8] sm:$0x3] %vm1236_vm6, %v1234_v12 }
 0xb45   :  { %1235 = vst.msk [vmem:[#allocation23] sm:$0xff] %vm404_vm5, %v1233_v13 }
 0xb46   :  { %1843 = shalt.err (!%p1840_p10)
}
 0xb47   :  { %s2314_s30 = sld [smem:[#allocation37_spill]] }
 0xb4d   :  { %s1844_s7 = scalar_lea.hbm %s2314_s30, 256 }
 0xb4e   :  { %p1845_p11 = scmp.ne.s32.totalorder %s2314_s30, %s1844_s7  ;;  %p1848_p12 = scmp.lt.u32.totalorder %s1844_s7, %s2314_s30 }
 0xb50   :  { %p1850_p13 = pnand %p1848_p12, %p1845_p11 }
 0xb52   :  { %1853 = shalt.err (!%p1850_p13)
}
 0xb53   :  { %1249 = dma.vmem_to_hbm [thread:$0]  %s1244_s16, 256, %s2314_s30, [#allocation4], %s1872_s22, %s1872_s22, %s1873_s3  }
 0xb54   :  { %1868 = dma.done.wait [#allocation4], 256  }
 0xb55   :  { %1869 = vsyncadd [#allocation4], 4294967040 }
 0xb56   :  { %1253 = vsyncpa [#allocation3], 1 }
 0xb57   :  { %1254 = vsyncpa [#allocation6], 1 }
 0xb58   :  { %1255 = vsyncpa [#allocation9], 1 }
 0xb59   :  { %1256 = vsyncpa [#allocation12], 1 }
 0xb5a   :  { %1257 = vsyncpa [#allocation15], 1 }
 0xb5b   :  { %1258 = vsyncpa [#allocation18], 1 }
 0xb5c   :  { %1259 = vsyncpa [#allocation21], 1 }
 0xb5d   :  { %1260 = vsyncpa [#allocation4], 1 }

</bundles_post_ra>
